<compile_context>
chip_gen: v5e
topology: v5e:2x2
jax: 0.10.0
libtpu: 0.0.40
codegen_flags: <defaults>
</compile_context>

<pallas_src>
import functools

import jax
import jax.numpy as jnp
import numpy as np
from jax import lax
from jax.experimental import pallas as pl
from jax.experimental.pallas import tpu as pltpu

_LANE = 128
_NSPLIT = 2                              # partial-sum slots / v7x TensorCores
_TARGET_BLOCK_BYTES = 2 * 1024 * 1024    # ~2 MiB per input block per buffer
_MAX_TILE_COLS = 2048                    # lanes per block (multiple of 128)


def _pick_tiles(nrows, ncols, itemsize):
    """Pick a (tile_r, tile_c) block: multiples of the min tile (or full extent),
    sized to ~_TARGET_BLOCK_BYTES per buffer (VMEM lane padding accounted for)."""
    itemsize = int(itemsize)
    sub = max(8, 32 // itemsize)                       # 8 for f32, 16 for bf16
    tile_c = ncols if ncols <= _MAX_TILE_COLS else _MAX_TILE_COLS
    tile_c_pad = ((tile_c + _LANE - 1) // _LANE) * _LANE
    rows_budget = _TARGET_BLOCK_BYTES // (tile_c_pad * itemsize)
    rows_budget = max(sub, (rows_budget // sub) * sub)
    tile_r = nrows if nrows <= rows_budget else rows_budget
    return tile_r, tile_c


def _sse_kernel(p_ref, t_ref, o_ref, acc_ref, *,
                nrows, ncols, tile_r, tile_c, blocks_per_split, split_rows):
    """Accumulate sum((pred - target)^2) over the valid (unmasked) elements.

    Grid = (split, row-blocks-ish, col-blocks-ish). acc_ref is a block-shaped
    VMEM accumulator updated with pure lane-parallel VPU adds every step; the
    single cross-lane reduce happens on the last step of each split, into that
    split's private 128-lane output slot.
    """
    s = pl.program_id(0)
    i = pl.program_id(1)
    j = pl.program_id(2)

    @pl.when((i == 0) & (j == 0))
    def _init():
        acc_ref[...] = jnp.zeros_like(acc_ref)

    # Unclamped global block indices. The index_map clamps the DMA source so it
    # never reads fully out of bounds; the mask below zeroes any duplicated or
    # out-of-range contribution (including ragged row/col tails).
    if split_rows:
        rb = s * blocks_per_split + i
        cb = j
    else:
        rb = i
        cb = s * blocks_per_split + j

    row0 = rb * tile_r
    col0 = cb * tile_c
    rid = row0 + lax.broadcasted_iota(jnp.int32, (tile_r, tile_c), 0)
    cid = col0 + lax.broadcasted_iota(jnp.int32, (tile_r, tile_c), 1)
    valid = (rid < nrows) & (cid < ncols)

    # Native-dtype inputs; cast to f32 on the VPU inside the kernel.
    d = p_ref[...].astype(jnp.float32) - t_ref[...].astype(jnp.float32)
    acc_ref[...] += jnp.where(valid, d * d, 0.0)       # pure VPU, lane-parallel

    @pl.when((i == pl.num_programs(1) - 1) & (j == pl.num_programs(2) - 1))
    def _finalize():
        sse = jnp.sum(acc_ref[...])                    # single XLU reduce
        o_ref[...] = jnp.zeros((1, _LANE), jnp.float32) + sse


def _sse_partials(pred2d, target2d):
    """pred2d/target2d: (R, C) arrays (any float dtype). Returns (NSPLIT,) f32
    partial sums of squared error; their sum is the exact SSE."""
    nrows, ncols = pred2d.shape
    itemsize = max(pred2d.dtype.itemsize, target2d.dtype.itemsize)
    tile_r, tile_c = _pick_tiles(nrows, ncols, itemsize)

    n_rblk = pl.cdiv(nrows, tile_r)
    n_cblk = pl.cdiv(ncols, tile_c)
    split_rows = n_rblk >= n_cblk
    if split_rows:
        bps = pl.cdiv(n_rblk, _NSPLIT)
        grid = (_NSPLIT, bps, n_cblk)

        def in_map(s, i, j):
            return (jnp.minimum(s * bps + i, n_rblk - 1), j)
    else:
        bps = pl.cdiv(n_cblk, _NSPLIT)
        grid = (_NSPLIT, n_rblk, bps)

        def in_map(s, i, j):
            return (i, jnp.minimum(s * bps + j, n_cblk - 1))

    kernel = functools.partial(
        _sse_kernel,
        nrows=nrows, ncols=ncols, tile_r=tile_r, tile_c=tile_c,
        blocks_per_split=bps, split_rows=split_rows)

    n_elems = nrows * ncols
    out = pl.pallas_call(
        kernel,
        out_shape=jax.ShapeDtypeStruct((1, _NSPLIT * _LANE), jnp.float32),
        grid_spec=pltpu.PrefetchScalarGridSpec(
            num_scalar_prefetch=0,
            grid=grid,
            in_specs=[
                pl.BlockSpec((tile_r, tile_c), in_map),
                pl.BlockSpec((tile_r, tile_c), in_map),
            ],
            out_specs=pl.BlockSpec((1, _LANE), lambda s, i, j: (0, s)),
            scratch_shapes=[pltpu.VMEM((tile_r, tile_c), jnp.float32)],
        ),
        compiler_params=pltpu.CompilerParams(
            # split axis across TCs on v7x; reduction axes stay sequential
            dimension_semantics=("parallel", "arbitrary", "arbitrary"),
            # worst-case working set ~10 MiB (2 inputs x 2 bufs x 2 MiB + acc);
            # 32 MiB is safe on v5e/v6e (128 MiB phys) and v7x (64 MiB phys).
            vmem_limit_bytes=32 * 1024 * 1024,
        ),
        cost_estimate=pl.CostEstimate(
            flops=3 * n_elems,
            transcendentals=0,
            bytes_accessed=n_elems * (int(pred2d.dtype.itemsize)
                                      + int(target2d.dtype.itemsize))
                           + _NSPLIT * _LANE * 4,
        ),
    )(pred2d, target2d)

    return out.reshape(_NSPLIT, _LANE)[:, 0]


@jax.jit
def _mse_2d(pred2d, target2d):
    partials = _sse_partials(pred2d, target2d)
    n = pred2d.shape[0] * pred2d.shape[1]
    return jnp.sum(partials) / jnp.float32(n)


class SimpleMultiModalCriterionPallas:
    """JAX/Pallas port of SimpleMultiModalCriterion (drop-in MSELoss replacement)."""

    def __init__(self, common_indices, common_weight: float = 1.2):
        self.common_indices = list(common_indices)
        self.common_weight = float(common_weight)
        print("SimpleMultiModalCriterion初始化:")
        print(f"  common_indices: {self.common_indices}")
        print(f"  common_weight: {self.common_weight}")

    def __call__(self, pred, target, channel_idx=None, is_common=None):
        pred = jnp.asarray(pred)      # native dtype: no wrapper f32 cast
        target = jnp.asarray(target)
        assert pred.shape == target.shape, "pred/target shape mismatch"

        if pred.ndim == 1:
            p2d, t2d = pred[None, :], target[None, :]          # [T] -> [1, T]
        elif pred.ndim == 2:
            p2d, t2d = pred, target                            # [B, T]
        else:
            # generic fallback: collapse leading dims (no padding of elements)
            p2d = pred.reshape(-1, pred.shape[-1])
            t2d = target.reshape(-1, target.shape[-1])

        mse = _mse_2d(p2d, t2d)

        # Python-level branching, same as the PyTorch forward.
        if is_common or (channel_idx is not None and channel_idx in self.common_indices):
            return self.common_weight * mse
        return mse


if __name__ == "__main__":
    key = jax.random.PRNGKey(0)
    k1, k2, k3, k4, k5, k6 = jax.random.split(key, 6)

    crit = SimpleMultiModalCriterionPallas(common_indices=[0, 2, 5], common_weight=1.2)

    # small shapes consistent with the module's [B, T] / [T] convention
    B, T = 4, 600
    pred = jax.random.normal(k1, (B, T), dtype=jnp.float32)
    target = jax.random.normal(k2, (B, T), dtype=jnp.float32)

    loss_plain = crit(pred, target, channel_idx=1, is_common=False)   # plain MSE
    loss_common = crit(pred, target, channel_idx=2)                   # weighted
    loss_flag = crit(pred[0], target[0], is_common=True)              # 1-D + flag

    # slightly larger ragged case: exercises multi-block grid + tail masking
    pb = jax.random.normal(k3, (8, 4500), dtype=jnp.float32)
    tb = jax.random.normal(k4, (8, 4500), dtype=jnp.float32)
    loss_big = crit(pb, tb, channel_idx=3)

    # bf16 inputs go into the kernel untouched (no wrapper f32 cast)
    pc = jax.random.normal(k5, (16, 3000), dtype=jnp.bfloat16)
    tc = jax.random.normal(k6, (16, 3000), dtype=jnp.bfloat16)
    loss_bf16 = crit(pc, tc, channel_idx=0)

    jax.block_until_ready((loss_plain, loss_common, loss_flag, loss_big, loss_bf16))

    # reference checks (same semantics as nn.MSELoss)
    ref = jnp.mean((pred - target) ** 2)
    ref1d = jnp.mean((pred[0] - target[0]) ** 2)
    ref_big = jnp.mean((pb - tb) ** 2)
    ref_bf16 = jnp.mean((pc.astype(jnp.float32) - tc.astype(jnp.float32)) ** 2)

    assert np.allclose(np.asarray(loss_plain), np.asarray(ref), rtol=1e-5, atol=1e-6)
    assert np.allclose(np.asarray(loss_common), 1.2 * np.asarray(ref), rtol=1e-5, atol=1e-6)
    assert np.allclose(np.asarray(loss_flag), 1.2 * np.asarray(ref1d), rtol=1e-5, atol=1e-6)
    assert np.allclose(np.asarray(loss_big), np.asarray(ref_big), rtol=1e-5, atol=1e-6)
    assert np.allclose(np.asarray(loss_bf16), 1.2 * np.asarray(ref_bf16), rtol=1e-5, atol=1e-6)

    print("KERNEL_OK")
</pallas_src>

<mosaic_0001>
module attributes {stable_mosaic.version = 11 : i64} {
  func.func @_sse_kernel(%arg0: i32, %arg1: i32, %arg2: i32, %arg3: memref<4x600xf32, #tpu.memory_space<vmem>>, %arg4: memref<4x600xf32, #tpu.memory_space<vmem>>, %arg5: memref<1x128xf32, #tpu.memory_space<vmem>>, %arg6: memref<4x600xf32, #tpu.memory_space<vmem>>) attributes {dimension_semantics = [#tpu.dimension_semantics<parallel>, #tpu.dimension_semantics<arbitrary>, #tpu.dimension_semantics<arbitrary>], iteration_bounds = array<i64: 2, 1, 1>, scalar_prefetch = 0 : i64, scratch_operands = 1 : i64, tpu.core_type = #tpu.core_type<tc>, window_params = [{transform_indices = @transform_0, window_bounds = array<i64: 4, 600>}, {transform_indices = @transform_1, window_bounds = array<i64: 4, 600>}, {transform_indices = @transform_2, window_bounds = array<i64: 1, 128>}]} {
    %c0_i32 = arith.constant 0 : i32
    %0 = arith.cmpi eq, %arg1, %c0_i32 : i32
    %c0_i32_0 = arith.constant 0 : i32
    %1 = arith.cmpi eq, %arg2, %c0_i32_0 : i32
    %2 = arith.andi %0, %1 : i1
    %3 = arith.extui %2 : i1 to i32
    %c0_i32_1 = arith.constant 0 : i32
    %4 = arith.cmpi ne, %3, %c0_i32_1 : i32
    scf.if %4 {
      %cst_14 = arith.constant 0.000000e+00 : f32
      %34 = vector.broadcast %cst_14 : f32 to vector<4x600xf32>
      %c0_15 = arith.constant 0 : index
      %c0_16 = arith.constant 0 : index
      %35 = vector.load %arg6[%c0_15, %c0_16] : memref<4x600xf32, #tpu.memory_space<vmem>>, vector<4x600xf32>
      tpu.vector_store %arg6[%c0_15, %c0_16], %34 {strides = array<i32>} : memref<4x600xf32, #tpu.memory_space<vmem>>, vector<4x600xf32>,
    } else {
    }
    %c1_i32 = arith.constant 1 : i32
    %5 = arith.muli %arg0, %c1_i32 : i32
    %6 = arith.addi %5, %arg1 : i32
    %c4_i32 = arith.constant 4 : i32
    %7 = arith.muli %6, %c4_i32 : i32
    %c600_i32 = arith.constant 600 : i32
    %8 = arith.muli %arg2, %c600_i32 : i32
    %9 = tpu.iota {dimensions = array<i32: 0>} : vector<4x600xi32>
    %10 = vector.broadcast %7 : i32 to vector<4x600xi32>
    %11 = arith.addi %10, %9 : vector<4x600xi32>
    %12 = tpu.iota {dimensions = array<i32: 1>} : vector<4x600xi32>
    %13 = vector.broadcast %8 : i32 to vector<4x600xi32>
    %14 = arith.addi %13, %12 : vector<4x600xi32>
    %c4_i32_2 = arith.constant 4 : i32
    %15 = vector.broadcast %c4_i32_2 : i32 to vector<4x600xi32>
    %16 = arith.cmpi slt, %11, %15 : vector<4x600xi32>
    %c600_i32_3 = arith.constant 600 : i32
    %17 = vector.broadcast %c600_i32_3 : i32 to vector<4x600xi32>
    %18 = arith.cmpi slt, %14, %17 : vector<4x600xi32>
    %19 = arith.andi %16, %18 : vector<4x600xi1>
    %c0 = arith.constant 0 : index
    %c0_4 = arith.constant 0 : index
    %20 = vector.load %arg3[%c0, %c0_4] : memref<4x600xf32, #tpu.memory_space<vmem>>, vector<4x600xf32>
    %c0_5 = arith.constant 0 : index
    %c0_6 = arith.constant 0 : index
    %21 = vector.load %arg4[%c0_5, %c0_6] : memref<4x600xf32, #tpu.memory_space<vmem>>, vector<4x600xf32>
    %22 = arith.subf %20, %21 : vector<4x600xf32>
    %c0_7 = arith.constant 0 : index
    %c0_8 = arith.constant 0 : index
    %23 = vector.load %arg6[%c0_7, %c0_8] : memref<4x600xf32, #tpu.memory_space<vmem>>, vector<4x600xf32>
    %24 = arith.mulf %22, %22 : vector<4x600xf32>
    %cst = arith.constant 0.000000e+00 : f32
    %25 = vector.broadcast %cst : f32 to vector<4x600xf32>
    %26 = arith.select %19, %24, %25 : vector<4x600xi1>, vector<4x600xf32>
    %27 = arith.addf %23, %26 : vector<4x600xf32>
    %c0_9 = arith.constant 0 : index
    %c0_10 = arith.constant 0 : index
    %28 = vector.load %arg6[%c0_9, %c0_10] : memref<4x600xf32, #tpu.memory_space<vmem>>, vector<4x600xf32>
    tpu.vector_store %arg6[%c0_9, %c0_10], %27 {strides = array<i32>} : memref<4x600xf32, #tpu.memory_space<vmem>>, vector<4x600xf32>,
    %c0_i32_11 = arith.constant 0 : i32
    %29 = arith.cmpi eq, %arg1, %c0_i32_11 : i32
    %c0_i32_12 = arith.constant 0 : i32
    %30 = arith.cmpi eq, %arg2, %c0_i32_12 : i32
    %31 = arith.andi %29, %30 : i1
    %32 = arith.extui %31 : i1 to i32
    %c0_i32_13 = arith.constant 0 : i32
    %33 = arith.cmpi ne, %32, %c0_i32_13 : i32
    scf.if %33 {
      %c0_14 = arith.constant 0 : index
      %c0_15 = arith.constant 0 : index
      %34 = vector.load %arg6[%c0_14, %c0_15] : memref<4x600xf32, #tpu.memory_space<vmem>>, vector<4x600xf32>
      %35 = vector.shape_cast %34 : vector<4x600xf32> to vector<1x4x600xf32>
      %cst_16 = arith.constant dense<0.000000e+00> : vector<1xf32>
      %36 = vector.multi_reduction <add>, %35, %cst_16 [1, 2] : vector<1x4x600xf32> to vector<1xf32>
      %37 = vector.shape_cast %36 : vector<1xf32> to vector<1x1x1xf32>
      %38 = vector.extract %37[0, 0, 0] : f32 from vector<1x1x1xf32>
      %cst_17 = arith.constant 0.000000e+00 : f32
      %39 = vector.broadcast %cst_17 : f32 to vector<1x128xf32>
      %40 = vector.broadcast %38 : f32 to vector<1x128xf32>
      %41 = arith.addf %39, %40 : vector<1x128xf32>
      %c0_18 = arith.constant 0 : index
      %c0_19 = arith.constant 0 : index
      %42 = vector.load %arg5[%c0_18, %c0_19] : memref<1x128xf32, #tpu.memory_space<vmem>>, vector<1x128xf32>
      tpu.vector_store %arg5[%c0_18, %c0_19], %41 {strides = array<i32>} : memref<1x128xf32, #tpu.memory_space<vmem>>, vector<1x128xf32>,
    } else {
    }
    return
  }
  func.func @transform_0(%arg0: i32, %arg1: i32, %arg2: i32) -> (i32, i32) {
    %c1_i32 = arith.constant 1 : i32
    %0 = arith.muli %arg0, %c1_i32 : i32
    %1 = arith.addi %0, %arg1 : i32
    %c0_i32 = arith.constant 0 : i32
    %2 = arith.minsi %1, %c0_i32 : i32
    %c0_i32_0 = arith.constant 0 : i32
    return %2, %arg2 : i32, i32
  }
  func.func @transform_1(%arg0: i32, %arg1: i32, %arg2: i32) -> (i32, i32) {
    %c1_i32 = arith.constant 1 : i32
    %0 = arith.muli %arg0, %c1_i32 : i32
    %1 = arith.addi %0, %arg1 : i32
    %c0_i32 = arith.constant 0 : i32
    %2 = arith.minsi %1, %c0_i32 : i32
    %c0_i32_0 = arith.constant 0 : i32
    return %2, %arg2 : i32, i32
  }
  func.func @transform_2(%arg0: i32, %arg1: i32, %arg2: i32) -> (i32, i32) {
    %c0_i32 = arith.constant 0 : i32
    %c0_i32_0 = arith.constant 0 : i32
    return %c0_i32, %arg0 : i32, i32
  }
}

</mosaic_0001>

<bundles_post_ra>
// kernel: _mse_2d.1
= control target key start
LH: loop header
LB: loop body
LE: loop exit
PB: predicated region body
PF: predicated region fallthrough
CT: control target
= control target key end

     0   :  { %7 = vsyncpa [#allocation4], 0  ;;  %s810_s0 = inlined_call_operand.hbm [shape: f32[4,600], index: 0, kind: input, shape index: {}]   ;;  %s811_s1 = inlined_call_operand.hbm [shape: f32[4,600], index: 1, kind: input, shape index: {}]   ;;  %s812_s2 = inlined_call_operand.vmem [shape: f32[1,256], index: 2, kind: output, shape index: {}]  }
   0x1   :  { %9 = vsyncpa [#allocation4 + $0x1], 0 }
   0x2   :  { %10 = vsyncpa [#allocation6], 0 }
   0x3   :  { %12 = vsyncpa [#allocation6 + $0x1], 0  ;;  %s701_s9 = smov 0   ;;  %s703_s10 = smov 0  }
   0x4   :  { %s705_s11 = smov 0   ;;  %s707_s12 = smov 0  }
   0x5   :  { %s709_s13 = smov 0  }
   0x6 LB: > { %s492_s14 = sadd.s32 4294967295, %s681_s13   ;;  %s37_s15 = sadd.s32 1, %s677_s12  ;;  %s681_s13 = sphi %s709_s13, %s18_s13   ;;  %s677_s12 = sphi %s707_s12, %s818_s12   ;;  %s673_s11 = sphi %s705_s11, %s817_s11   ;;  %s669_s10 = sphi %s703_s10, %s800_s10   ;;  %s665_s9 = sphi %s701_s9, %s816_s9  }
   0x7   : > { %p39_p0 = scmp.ge.s32.totalorder %s37_s15, 2  ;;  %p662_p1 = scmp.ne.s32.totalorder %s669_s10, 0 }
   0x8   : > { %p60_p2 = scmp.eq.s32.totalorder %s681_s13, 0  ;;  %p65_p3 = scmp.ne.s32.totalorder %s669_s10, %s665_s9 }
   0x9   : > { %s820_s15 = smov (%p39_p0, %s37_s15), 0  ;;  %p66_p4 = scmp.eq.s32.totalorder %s492_s14, 0 }
   0xa   : > { %p61_p5 = por %p662_p1, %p60_p2  ;;  %p520_p7 = scmp.lt.s32.totalorder %s681_s13, 2 }
   0xb   : > { %p731_p6 = por %p66_p4, %p65_p3  ;;  %s165_s20 = sshll.u32 %s810_s0, 4  ;;  %s166_s20 = int_to_ptr.hbm [resolvable:$true] %s165_s20 }
   0xc   : > { %p736_p8 = pnand %p520_p7, %p61_p5  ;;  %s683_s21 = smov [#allocation3]  }
   0xd   : > { %s167_s22 = sshll.u32 %s683_s21, 4  ;;  %s570_s23 = sshra.s32 %s166_s20, 4  ;;  %s168_s22 = int_to_ptr.vmem [resolvable:$true] %s167_s22  ;;  %s571_s23 = int_to_ptr.hbm [resolvable:$true] %s570_s23 }
   0xe   : > { %s572_s24 = scalar_lea.hbm %s571_s23, 20  ;;  %p574_p10 = pneg %p736_p8 }
   0xf   : > { %p573_p9 = scmp.ne.s32.totalorder %s571_s23, %s572_s24  ;;  %s577_s27 = scalar_lea.hbm %s810_s0, 20 }
  0x10   : > { %p579_p13 = scmp.lt.s32.totalorder %s577_s27, %s572_s24 }
  0x11   : > { %p575_p11 = pnand %p574_p10, %p573_p9 }
  0x13   : > { %p576_p12 = pneg %p575_p11 }
  0x15   : > { %p581_p0 = pnand %p579_p13, %p576_p12 }
  0x17   : > { %584 = shalt.err (!%p581_p0)
}
  0x18   : > { %516 = dma.hbm_to_vmem [thread:$0]  (!%p736_p8), %s166_s20, 320, %s168_s22, [#allocation4]  }
  0x19   : > { %p498_p1 = scmp.ge.s32.totalorder %s681_s13, 1  ;;  %p197_p2 = scmp.lt.s32.totalorder %s681_s13, 3 }
  0x1a   : > { %s190_s3 = sshll.u32 %s811_s1, 4  ;;  %s684_s4 = smov [#allocation5]   ;;  %s191_s3 = int_to_ptr.hbm [resolvable:$true] %s190_s3 }
  0x1b   : > { %p755_p3 = pnand %p498_p1, %p197_p2  ;;  %s192_s5 = sshll.u32 %s684_s4, 4  ;;  %s193_s5 = int_to_ptr.vmem [resolvable:$true] %s192_s5 }
  0x1c   : > { %s600_s6 = sshra.s32 %s191_s3, 4  ;;  %s607_s14 = scalar_lea.hbm %s811_s1, 20  ;;  %s601_s6 = int_to_ptr.hbm [resolvable:$true] %s600_s6 }
  0x1d   : > { %s602_s7 = scalar_lea.hbm %s601_s6, 20 }
  0x1e   : > { %p603_p4 = scmp.ne.s32.totalorder %s601_s6, %s602_s7  ;;  %p609_p9 = scmp.lt.s32.totalorder %s607_s14, %s602_s7 }
  0x20   : > { %p605_p5 = pnand %p603_p4, %p574_p10 }
  0x22   : > { %p606_p7 = pneg %p605_p5 }
  0x24   : > { %p611_p11 = pnand %p609_p9, %p606_p7 }
  0x26   : > { %614 = shalt.err (!%p611_p11)
}
  0x27   : > { %519 = dma.hbm_to_vmem [thread:$0]  (!%p736_p8), %s191_s3, 320, %s193_s5, [#allocation6]  }
  0x28   : > { %201 = sbr.rel (%p755_p3) target bundleno = 266 (0x10a), region = 28  ;;  %s203_s18 = sand.u32 (!%p755_p3), 1, %s669_s10  }
  0x29   : > { %s506_s19 = smul.u32 (!%p755_p3), 20, %s203_s18  ;;  %s204_s20 = scalar_lea.sflag (!%p755_p3), [#allocation4], %s203_s18 }
  0x2b   : > { %s207_s21 = scalar_lea.vmem (!%p755_p3), [#allocation3], %s506_s19 }
  0x2d   : > { %655 = dma.done.wait (%p731_p6), %s204_s20, 320  }
  0x2e   : > { %657 = vsyncadd (%p731_p6), %s204_s20, 4294966976  ;;  %s214_s22 = scalar_lea.sflag [#allocation6], %s203_s18  ;;  %s217_s23 = scalar_lea.vmem [#allocation5], %s506_s19 }
  0x2f   : > { %659 = dma.done.wait (%p731_p6), %s214_s22, 320  }
  0x30   : > { %661 = vsyncadd (%p731_p6), %s214_s22, 4294966976  ;;  %vm261_vm0 = vcmask 715776   ;;  %v685_v0 = vmov 0.0   ;;  %v266_v1 = vlaneseq  ;;  %s499_s17 = sshll.u32 %s673_s11, 2  ;;  %v293_v2 = vld [vmem:[%s207_s21] sm:$0xff]  ;;  %v294_v3 = vld [vmem:[%s207_s21 + $0x8] sm:$0xff] }
  0x31   : > { %262 = vst.msk [vmem:[#allocation2 + $0x10] sm:$0xf] %vm261_vm0, %v685_v0  ;;  %v295_v4 = vld [vmem:[%s207_s21 + $0x10] sm:$0xf]  ;;  %v296_v5 = vld [vmem:[%s217_s23] sm:$0xff]  ;;  %v268_v12 = vstv %s499_s17  ;;  %vm337_vm4 = vcmask 1043456  }
  0x32   : > { %v297_v6 = vld [vmem:[%s217_s23 + $0x8] sm:$0xff]  ;;  %v267_v7 = vshrl.u32 %v266_v1, 7  ;;  %v271_v8 = vand.u32 127, %v266_v1  ;;  %v298_v9 = vld [vmem:[%s217_s23 + $0x10] sm:$0xf]  ;;  %v299_v10 = vsub.f32 %v293_v2, %v296_v5  ;;  %p250_p6 = scmp.lt.s32.totalorder %s673_s11, 1 }
  0x33   : > { %v300_v11 = vsub.f32 %v294_v3, %v297_v6  ;;  %v301_v13 = vsub.f32 %v295_v4, %v298_v9 }
  0x34   : > { %v305_v14 = vmul.f32 %v299_v10, %v299_v10  ;;  %v269_v17 = vadd.s32 %v268_v12, %v267_v7  ;;  %v275_v18 = vadd.s32 512, %v271_v8  ;;  %s822_s11 = smov (!%p250_p6, %s673_s11), 1 }
  0x35   : > { %v306_v15 = vmul.f32 %v300_v11, %v300_v11  ;;  %v307_v16 = vmul.f32 %v301_v13, %v301_v13  ;;  %s252_s25 = scalar_lea.vmem %s812_s2, %s822_s11 }
  0x36   : > { %311 = vst [vmem:[#allocation1] ss:$2 sm:$0xff] %v305_v14  ;;  %vm282_vm1 = vcmp.lt.s32.totalorder %v269_v17, 4  ;;  %vm287_vm2 = vcmp.lt.s32.totalorder %v275_v18, 600 }
  0x37   : > { %313 = vst [vmem:[#allocation1 + $0x10] ss:$2 sm:$0xff] %v306_v15  ;;  %vm292_vm3 = vmand %vm282_vm1, %vm287_vm2 }
  0x38   : > { %315 = vst [vmem:[#allocation1 + $0x20] ss:$2 sm:$0xff] %v307_v16  ;;  %v304_v19 = vld [vmem:[#allocation2 + $0x10] sm:$0xf] }
  0x3d   : > { %v316_v20 = vld.sshfl [vmem:[#allocation1] sm:$0xff pattern:$0x75316420]  ;;  %v317_v21 = vld.sshfl [vmem:[#allocation1 + $0x8] sm:$0xff pattern:$0x75316420] }
  0x3e   : > { %v318_v22 = vld.sshfl [vmem:[#allocation1 + $0x10] sm:$0xff pattern:$0x75316420]  ;;  %v319_v23 = vld.sshfl [vmem:[#allocation1 + $0x18] sm:$0xff pattern:$0x75316420] }
  0x3f   : > { %v320_v24 = vld.sshfl [vmem:[#allocation1 + $0x20] sm:$0xff pattern:$0x75316420]  ;;  %v326_v25 = vsel %vm282_vm1, %v316_v20, 0.0  ;;  %v327_v26 = vsel %vm282_vm1, %v317_v21, 0.0  ;;  %v328_v27 = vsel %vm282_vm1, %v318_v22, 0.0 }
  0x40   : > { %v329_v28 = vsel %vm282_vm1, %v319_v23, 0.0  ;;  %v330_v29 = vsel %vm292_vm3, %v320_v24, 0.0  ;;  %v335_v30 = vrot.slane %v327_v26, 4 }
  0x41   : > { %v336_v31 = vrot.slane %v329_v28, 4  ;;  %v344_v32 = vadd.f32 %v330_v29, %v304_v19 }
  0x42   : > { %v338_v33 = vsel %vm337_vm4, %v326_v25, %v335_v30 }
  0x43   : > { %v339_v34 = vsel %vm337_vm4, %v328_v27, %v336_v31  ;;  %348 = vst.msk [vmem:[#allocation2 + $0x10] sm:$0xf] %vm261_vm0, %v344_v32 }
  0x44   : > { %357 = vst [vmem:[#allocation1] ss:$2 sm:$0xff] %v338_v33 }
  0x45   : > { %359 = vst [vmem:[#allocation1 + $0x10] ss:$2 sm:$0xff] %v339_v34 }
  0x4a   : > { %v353_v35 = vld [vmem:[#allocation2 + $0x10] sm:$0xf] }
  0x4b   : > { %361 = vst [vmem:[#allocation1 + $0x20] ss:$2 sm:$0xff] %v353_v35  ;;  %v362_v36 = vld.sshfl [vmem:[#allocation1] sm:$0xff pattern:$0x75316420] }
  0x4c   : > { %v363_v37 = vld.sshfl [vmem:[#allocation1 + $0x8] sm:$0xff pattern:$0x75316420]  ;;  %v364_v38 = vld.sshfl [vmem:[#allocation1 + $0x10] sm:$0xff pattern:$0x75316420] }
  0x4d   : > { %v365_v39 = vld.sshfl [vmem:[#allocation1 + $0x18] sm:$0xff pattern:$0x75316420]  ;;  %v372_v40 = vsel %vm337_vm4, %v362_v36, 0.0  ;;  %v373_v41 = vsel %vm337_vm4, %v363_v37, 0.0  ;;  %v375_v42 = vsel %vm337_vm4, %v364_v38, 0.0 }
  0x4e   : > { %v374_v43 = vadd.f32 %v373_v41, %v372_v40  ;;  %v377_v45 = vsel %vm337_vm4, %v365_v39, 0.0 }
  0x50   : > { %v376_v46 = vadd.f32 %v375_v42, %v374_v43 }
  0x52   : > { %v366_v44 = vld.sshfl [vmem:[#allocation1 + $0x20] sm:$0xff pattern:$0x75316420]  ;;  %v378_v48 = vadd.f32 %v377_v45, %v376_v46 }
  0x53   : > { %v379_v47 = vsel %vm261_vm0, %v366_v44, 0.0 }
  0x54   : > { %v380_v49 = vadd.f32 %v379_v47, %v378_v48 }
  0x56   : > { %381 = vadd.xlane.f32.xlu0 %v380_v49 }
  0xc9   : > { %v382_v50 = vpop.xlane.xlu0 %381 }
  0xca   : > { %v383_v51 = vrot.slane %v382_v50, 4 }
  0xcc   : > { %v384_v52 = vadd.f32 %v383_v51, %v382_v50 }
  0xce   : > { %v385_v53 = vrot.slane %v384_v52, 2 }
  0xd0   : > { %v386_v54 = vadd.f32 %v385_v53, %v384_v52 }
  0xd2   : > { %v387_v55 = vrot.slane %v386_v54, 1 }
  0xd4   : > { %v388_v56 = vadd.f32 %v387_v55, %v386_v54 }
  0xd6   : > { %507 = vpush %v388_v56 }
 0x107   : > { %s508_s26 = spop %507 }
 0x108   : > { %v390_v57 = vstv %s508_s26 }
 0x109   : > { %392 = vst [vmem:[%s252_s25] sm:$0x1] %v390_v57 }
 0x10a PF: > { %s18_s13 = sadd.s32 1, %s681_s13   ;;  %s816_s9 = smov %s669_s10 }
 0x10b   : > { %p15_p8 = scmp.ge.s32.totalorder %s18_s13, 4   ;;  %s800_s10 = smov 0  }
 0x10c   : > { %s817_s11 = smov %s677_s12  ;;  %s818_s12 = smov %s820_s15 }
 0x10d   :  { %17 = sbr.rel (!%p15_p8) target bundleno = 6 (0x6), region = 93 }
 0x112   :  { %410 = vsyncpa [#allocation4], 1 }
 0x113   :  { %412 = vsyncpa [#allocation4 + $0x1], 1 }
 0x114   :  { %413 = vsyncpa [#allocation6], 1 }
 0x115   :  { %415 = vsyncpa [#allocation6 + $0x1], 1 }

</bundles_post_ra>
